<compile_context>
chip_gen: v5e
topology: v5e:2x2
jax: 0.10.0
libtpu: 0.0.40
codegen_flags: <defaults>
</compile_context>

<pallas_src>
import functools

import numpy as np
import jax
import jax.numpy as jnp
from jax.experimental import pallas as pl
from jax.experimental.pallas import tpu as pltpu

EPS = 1e-5
ADT = jnp.bfloat16        # activation / GEMM-operand dtype (MXU native)


# ----------------------------------------------------------------------------
# Pallas kernels
# ----------------------------------------------------------------------------


def _mm_affine_act_kernel(a_ref, b_ref, s_ref, t_ref, o_ref, acc_ref, *, act):
    """acc += A@B (bf16 x bf16 -> f32); last K step: out = act(acc*scale + shift)."""
    k = pl.program_id(2)

    @pl.when(k == 0)
    def _():
        acc_ref[...] = jnp.zeros_like(acc_ref)

    acc_ref[...] += jnp.dot(a_ref[...], b_ref[...],
                            preferred_element_type=jnp.float32)

    @pl.when(k == pl.num_programs(2) - 1)
    def _():
        y = acc_ref[...] * s_ref[...] + t_ref[...]
        if act == "relu":
            y = jnp.maximum(y, 0.0)
        elif act == "sigmoid":
            y = jax.nn.sigmoid(y)
        o_ref[...] = y.astype(o_ref.dtype)


def _pick_block(dim, cap, quantum):
    """Largest b with (b == dim) or (b % quantum == 0 and dim % b == 0), b <= cap."""
    if dim <= cap:
        return dim
    b = (cap // quantum) * quantum
    while b >= quantum:
        if dim % b == 0:
            return b
        b -= quantum
    return dim                      # fallback: full extent


def matmul_affine_act(a, b, scale, shift, act="none", out_dtype=ADT):
    """out = act((a @ b) * scale + shift); scale/shift per output column.

    bf16 operands, f32 accumulation, fused affine+activation epilogue.
    """
    M, K = a.shape
    K2, N = b.shape
    assert K == K2 and scale.shape == (N,) and shift.shape == (N,)
    tm = _pick_block(M, 256, 8)
    tn = _pick_block(N, 512, 128)
    tk = _pick_block(K, 2048, 128)
    grid = (M // tm, N // tn, K // tk)
    return pl.pallas_call(
        functools.partial(_mm_affine_act_kernel, act=act),
        out_shape=jax.ShapeDtypeStruct((M, N), out_dtype),
        grid_spec=pltpu.PrefetchScalarGridSpec(
            num_scalar_prefetch=0,
            grid=grid,
            in_specs=[
                pl.BlockSpec((tm, tk), lambda i, j, k: (i, k)),
                pl.BlockSpec((tk, tn), lambda i, j, k: (k, j)),
                pl.BlockSpec((1, tn), lambda i, j, k: (0, j)),
                pl.BlockSpec((1, tn), lambda i, j, k: (0, j)),
            ],
            out_specs=pl.BlockSpec((tm, tn), lambda i, j, k: (i, j)),
            scratch_shapes=[pltpu.VMEM((tm, tn), jnp.float32)],
        ),
        compiler_params=pltpu.CompilerParams(
            dimension_semantics=("parallel", "parallel", "arbitrary"),
            vmem_limit_bytes=32 * 1024 * 1024),
    )(a.astype(ADT), b.astype(ADT),
      scale.astype(jnp.float32).reshape(1, N),
      shift.astype(jnp.float32).reshape(1, N))


def _dmsa_fuse_kernel(res_ref, x_ref, ch_ref, sp_ref, o_ref):
    # blocks: res/x (1, HW, C); ch (1, 1, C); sp (1, HW, 1)
    res = res_ref[...].astype(jnp.float32)
    x = x_ref[...].astype(jnp.float32)
    y = res + x * ch_ref[...].astype(jnp.float32) + x * sp_ref[...].astype(jnp.float32)
    o_ref[...] = jnp.maximum(y, 0.0).astype(o_ref.dtype)


def dmsa_fuse(res, x, ch, sp):
    """relu(res + x*ch + x*sp);  res/x: (N,HW,C), ch: (N,1,C), sp: (N,HW,1)."""
    N, HW, C = res.shape
    return pl.pallas_call(
        _dmsa_fuse_kernel,
        out_shape=jax.ShapeDtypeStruct((N, HW, C), res.dtype),
        grid_spec=pltpu.PrefetchScalarGridSpec(
            num_scalar_prefetch=0,
            grid=(N,),
            in_specs=[
                pl.BlockSpec((1, HW, C), lambda n: (n, 0, 0)),
                pl.BlockSpec((1, HW, C), lambda n: (n, 0, 0)),
                pl.BlockSpec((1, 1, C), lambda n: (n, 0, 0)),
                pl.BlockSpec((1, HW, 1), lambda n: (n, 0, 0)),
            ],
            out_specs=pl.BlockSpec((1, HW, C), lambda n: (n, 0, 0)),
        ),
        compiler_params=pltpu.CompilerParams(
            dimension_semantics=("parallel",)),
    )(res, x, ch, sp)


# ----------------------------------------------------------------------------
# Conv / deconv / pooling / resize glue (NHWC) built on the Pallas GEMM
# ----------------------------------------------------------------------------


def _im2col_nhwc(x, kh, kw, stride, padding, dilation):
    N, H, W, C = x.shape
    if padding > 0:
        x = jnp.pad(x, ((0, 0), (padding, padding), (padding, padding), (0, 0)))
    Hp, Wp = x.shape[1], x.shape[2]
    Ho = (Hp - (kh - 1) * dilation - 1) // stride + 1
    Wo = (Wp - (kw - 1) * dilation - 1) // stride + 1
    if kh == 1 and kw == 1 and stride == 1:
        return x.reshape(N * Ho * Wo, C), Ho, Wo       # 1x1 conv: pure reshape
    cols = []
    for i in range(kh):
        for j in range(kw):
            cols.append(x[:, i * dilation: i * dilation + (Ho - 1) * stride + 1: stride,
                          j * dilation: j * dilation + (Wo - 1) * stride + 1: stride, :])
    col = jnp.concatenate(cols, axis=-1)               # (N, Ho, Wo, kh*kw*C)
    return col.reshape(N * Ho * Wo, kh * kw * C), Ho, Wo


@functools.partial(jax.jit,
                   static_argnames=("kh", "kw", "stride", "padding", "dilation", "act"))
def _conv2d_impl(x, wm, scale, shift, *, kh, kw, stride, padding, dilation, act):
    N = x.shape[0]
    col, Ho, Wo = _im2col_nhwc(x, kh, kw, stride, padding, dilation)
    out = matmul_affine_act(col, wm, scale, shift, act=act)
    return out.reshape(N, Ho, Wo, wm.shape[1])


def conv2d(x, p, *, stride=1, padding=0, dilation=1, act="none"):
    kh, kw = p["k"]
    return _conv2d_impl(x, p["wm"], p["scale"], p["shift"],
                        kh=kh, kw=kw, stride=stride, padding=padding,
                        dilation=dilation, act=act)


def conv_transpose2d(x, p, *, stride, padding, output_padding, act="none"):
    """PyTorch ConvTranspose2d on NHWC; p['wm'] is the pre-flipped equivalent weight."""
    N, H, W, C = x.shape
    k = p["k"][0]
    Hd, Wd = (H - 1) * stride + 1, (W - 1) * stride + 1
    xd = jnp.zeros((N, Hd, Wd, C), x.dtype).at[:, ::stride, ::stride, :].set(x)
    pad = k - 1 - padding
    xd = jnp.pad(xd, ((0, 0), (pad, pad + output_padding),
                      (pad, pad + output_padding), (0, 0)))
    return conv2d(xd, p, stride=1, padding=0, dilation=1, act=act)


@functools.partial(jax.jit, static_argnames=("k", "stride", "padding"))
def maxpool2d(x, *, k=3, stride=2, padding=1):
    N, H, W, C = x.shape
    xp = jnp.pad(x, ((0, 0), (padding, padding), (padding, padding), (0, 0)),
                 constant_values=-np.inf)
    Ho = (H + 2 * padding - k) // stride + 1
    Wo = (W + 2 * padding - k) // stride + 1
    out = jnp.full((N, Ho, Wo, C), -np.inf, x.dtype)
    for i in range(k):
        for j in range(k):
            out = jnp.maximum(out, xp[:, i: i + (Ho - 1) * stride + 1: stride,
                                      j: j + (Wo - 1) * stride + 1: stride, :])
    return out


def _src_index(n_in, n_out):
    # bilinear sampling grid, align_corners=True
    if n_out == 1 or n_in == 1:
        src = np.zeros((n_out,), np.float64)
    else:
        src = np.arange(n_out, dtype=np.float64) * (n_in - 1) / (n_out - 1)
    lo = np.clip(np.floor(src).astype(np.int32), 0, n_in - 1)
    hi = np.minimum(lo + 1, n_in - 1)
    frac = (src - lo).astype(np.float32)
    return lo, hi, frac


@functools.partial(jax.jit, static_argnames=("out_hw",))
def bilinear_upsample(x, *, out_hw):
    """Bilinear resize (align_corners=True) on NHWC via gather + lerp."""
    N, h, w, C = x.shape
    H, W = out_hw
    if (h, w) == (H, W):
        return x
    ylo, yhi, yf = _src_index(h, H)
    xlo, xhi, xf = _src_index(w, W)
    xf32 = x.astype(jnp.float32)
    top, bot = xf32[:, ylo], xf32[:, yhi]                         # (N,H,w,C)
    yfb = jnp.asarray(yf).reshape(1, H, 1, 1)
    rows = top * (1.0 - yfb) + bot * yfb
    left, right = rows[:, :, xlo], rows[:, :, xhi]                # (N,H,W,C)
    xfb = jnp.asarray(xf).reshape(1, 1, W, 1)
    return (left * (1.0 - xfb) + right * xfb).astype(x.dtype)


# ----------------------------------------------------------------------------
# Deterministic parameter construction (weights pre-packed for the GEMM kernel)
# ----------------------------------------------------------------------------

_PKEY = jax.random.PRNGKey(0)
_CNT = [0]


def _next_key():
    _CNT[0] += 1
    return jax.random.fold_in(_PKEY, _CNT[0])


def nrm(shape, std):
    return (std * jax.random.normal(_next_key(), shape)).astype(jnp.float32)


def he(shape):
    fan_in = int(np.prod(shape[1:]))
    return nrm(shape, float(np.sqrt(2.0 / max(fan_in, 1))))


def _to_wm(w_oihw):
    """(Cout,Cin,kh,kw) -> (kh*kw*Cin, Cout) bf16 matrix matching NHWC im2col order."""
    cout, cin, kh, kw = w_oihw.shape
    return jnp.transpose(w_oihw, (2, 3, 1, 0)).reshape(kh * kw * cin, cout).astype(ADT)


def _affine(cout, bias, bn, bn_w):
    b = jnp.zeros((cout,), jnp.float32) if bias else None
    if bn:                                    # eval-mode BN: mean=0, var=1 folded
        g = (1.0 + nrm((cout,), 0.02)) if bn_w == "one" else nrm((cout,), 0.02)
        beta = jnp.zeros((cout,), jnp.float32)
        scale = g / np.float32(np.sqrt(1.0 + EPS))
        shift = beta + (scale * b if b is not None else 0.0)
    else:
        scale = jnp.ones((cout,), jnp.float32)
        shift = b if b is not None else jnp.zeros((cout,), jnp.float32)
    return scale, shift


def conv_entry(cin, cout, k, *, bias=False, bn=True, w_std=None, bn_w="one"):
    w = he((cout, cin, k, k)) if w_std is None else nrm((cout, cin, k, k), w_std)
    scale, shift = _affine(cout, bias, bn, bn_w)
    return {"wm": _to_wm(w), "k": (k, k), "scale": scale, "shift": shift}


def deconv_entry(cin, cout, k, *, bias=True, bn=True):
    w = he((cin, cout, k, k))                              # torch ConvTranspose2d layout
    weq = jnp.transpose(w[:, :, ::-1, ::-1], (1, 0, 2, 3))  # -> (cout, cin, k, k)
    scale, shift = _affine(cout, bias, bn, "one")
    return {"wm": _to_wm(weq), "k": (k, k), "scale": scale, "shift": shift}


# ----------------------------------------------------------------------------
# Modules
# ----------------------------------------------------------------------------


def make_basicblock(cin, cout, stride):
    p = {"c1": conv_entry(cin, cout, 3), "c2": conv_entry(cout, cout, 3),
         "stride": stride}
    if stride != 1 or cin != cout:
        p["down"] = conv_entry(cin, cout, 1)
    return p


def basicblock(p, x):
    out = conv2d(x, p["c1"], stride=p["stride"], padding=1, act="relu")
    out = conv2d(out, p["c2"], stride=1, padding=1, act="none")
    idn = conv2d(x, p["down"], stride=p["stride"], act="none") if "down" in p else x
    return jnp.maximum(out + idn, 0)


def make_resnet34():
    cfg = [(64, 64, 3, 1), (64, 128, 4, 2), (128, 256, 6, 2), (256, 512, 3, 2)]
    layers = []
    for cin, cout, nblk, stride in cfg:
        blocks = [make_basicblock(cin, cout, stride)]
        for _ in range(nblk - 1):
            blocks.append(make_basicblock(cout, cout, 1))
        layers.append(blocks)
    return {"conv1": conv_entry(3, 64, 7), "layers": layers}


def make_dac(c):
    return {"d1": conv_entry(c, c, 3, bias=True, bn=False),
            "d2": conv_entry(c, c, 3, bias=True, bn=False),
            "d3": conv_entry(c, c, 3, bias=True, bn=False),
            "c11": conv_entry(c, c, 1, bias=True, bn=False)}


def dac_forward(p, x):
    d1_lin = conv2d(x, p["d1"], padding=1, dilation=1, act="none")   # dilate1(x), reused
    d1o = jnp.maximum(d1_lin, 0)
    d2o = conv2d(conv2d(x, p["d2"], padding=3, dilation=3), p["c11"], act="relu")
    d2d1 = conv2d(d1_lin, p["d2"], padding=3, dilation=3)
    d3o = conv2d(d2d1, p["c11"], act="relu")
    d4o = conv2d(conv2d(d2d1, p["d3"], padding=5, dilation=5), p["c11"], act="relu")
    return x + d1o + d2o + d3o + d4o


def make_gpg(in_channels, width):
    n = len(in_channels)
    return {"convs": [conv_entry(in_channels[-1 - i], width, 3) for i in range(n)],
            "conv_out": conv_entry(n * width, width, 1),
            "dac": make_dac(width)}


def gpg_forward(p, inputs):
    n = len(inputs)
    feats = [conv2d(inputs[-1 - i], p["convs"][i], padding=1, act="relu")
             for i in range(n)]
    H, W = feats[-1].shape[1], feats[-1].shape[2]
    feats = [bilinear_upsample(f, out_hw=(H, W)) for f in feats[:-1]] + [feats[-1]]
    feat = jnp.concatenate(feats, axis=-1)
    feat = conv2d(feat, p["conv_out"], act="none")       # 1x1 conv + BN, no relu
    return dac_forward(p["dac"], feat)


def make_se(c, r=16):
    return {"conv1x1_wm": _to_wm(he((c, 2 * c, 1, 1))),
            "fc1_wm": jnp.transpose(he((c // r, c))).astype(ADT),
            "fc2_wm": jnp.transpose(he((c, c // r))).astype(ADT),
            "one_c": jnp.ones((c,), jnp.float32),
            "zero_c": jnp.zeros((c,), jnp.float32),
            "one_cr": jnp.ones((c // r,), jnp.float32),
            "zero_cr": jnp.zeros((c // r,), jnp.float32)}


def se_forward(p, x):                          # x: (N,H,W,C) -> gate (N,C)
    y_avg = jnp.mean(x, axis=(1, 2))
    y_max = jnp.max(x, axis=(1, 2))
    y = jnp.concatenate([y_avg, y_max], axis=1)          # (N, 2C)
    y = matmul_affine_act(y, p["conv1x1_wm"], p["one_c"], p["zero_c"], act="none")
    y = matmul_affine_act(y, p["fc1_wm"], p["one_cr"], p["zero_cr"], act="relu")
    y = matmul_affine_act(y, p["fc2_wm"], p["one_c"], p["zero_c"], act="sigmoid")
    return y


def make_spatialgate():
    # BasicConv init: conv ~ N(0,0.02), BN weight ~ N(0,0.02), BN bias 0, relu=False
    return {"spatial": conv_entry(2, 1, 7, bias=False, bn=True, w_std=0.02, bn_w="zero")}


def spatialgate(p, x):                         # x: (N,H,W,C) -> (N,H,W,1)
    x_max = jnp.max(x, axis=3, keepdims=True)
    x_mean = jnp.mean(x, axis=3, keepdims=True)
    xc = jnp.concatenate([x_max, x_mean], axis=3)
    return conv2d(xc, p["spatial"], padding=3, act="sigmoid")


def make_dmsa(inp=512):
    q = inp // 4
    a_parts = [conv_entry(inp, q, 1) for _ in range(4)]   # 4x (1x1 conv + BN) fused
    a = {"wm": jnp.concatenate([e["wm"] for e in a_parts], axis=1), "k": (1, 1),
         "scale": jnp.concatenate([e["scale"] for e in a_parts]),
         "shift": jnp.concatenate([e["shift"] for e in a_parts])}
    return {"a": a, "q": q,
            "b": [conv_entry(q, q, 3) for _ in range(4)],  # dilated 3x3 + BN + relu
            "deform": conv_entry(inp, inp, 3, bias=False, bn=False),
            "se": make_se(inp), "sg": make_spatialgate(),
            "gamma": jnp.array([1.0], jnp.float32),
            "beta": jnp.array([1.0], jnp.float32)}


def dmsa_forward(p, x):                        # x: (N,H,W,512)
    N, H, W, C = x.shape
    q = p["q"]
    dils = (1, 3, 5, 7)
    # four dilate-branch 1x1 convs (512 -> 4*128) fused into ONE GEMM
    a = conv2d(x, p["a"], act="relu")
    branches = [conv2d(a[..., i * q:(i + 1) * q], p["b"][i],
                       padding=dils[i], dilation=dils[i], act="relu")
                for i in range(4)]
    cat = jnp.concatenate(branches, axis=-1)               # (N,H,W,512)
    # TODO(synk): DeformConv2d approximated by a standard 3x3 conv (zero offsets).
    x_att = conv2d(cat, p["deform"], padding=1, act="relu")
    ch = se_forward(p["se"], x_att)                        # (N,C) sigmoid gate
    sp = spatialgate(p["sg"], x_att)                       # (N,H,W,1) sigmoid gate
    ch_g = (p["gamma"] * ch.astype(jnp.float32)).astype(x.dtype).reshape(N, 1, C)
    sp_b = (p["beta"] * sp.astype(jnp.float32)).astype(x.dtype).reshape(N, H * W, 1)
    out = dmsa_fuse(x.reshape(N, H * W, C), x_att.reshape(N, H * W, C), ch_g, sp_b)
    return out.reshape(N, H, W, C)


def make_decoder(cin, nf):
    m = cin // 4
    return {"c1": conv_entry(cin, m, 1, bias=True, bn=True),
            "dc": deconv_entry(m, m, 3, bias=True, bn=True),
            "c3": conv_entry(m, nf, 1, bias=True, bn=True)}


def decoder(p, x):
    x = conv2d(x, p["c1"], act="relu")
    x = conv_transpose2d(x, p["dc"], stride=2, padding=1, output_padding=1, act="relu")
    return conv2d(x, p["c3"], act="relu")


# ----------------------------------------------------------------------------
# DSMA_cpf
# ----------------------------------------------------------------------------


def make_dsma(num_classes=1):
    return {"resnet": make_resnet34(),
            "mce2": make_gpg([64, 128, 256, 512], 64),
            "mce3": make_gpg([128, 256, 512], 128),
            "mce4": make_gpg([256, 512], 256),
            "dmsa": make_dmsa(512),
            "dec4": make_decoder(512, 256),
            "dec3": make_decoder(256, 128),
            "dec2": make_decoder(128, 64),
            "dec1": make_decoder(64, 64),
            "fdeconv": deconv_entry(64, 32, 4, bias=True, bn=False),
            "fconv2": conv_entry(32, 32, 3, bias=True, bn=False),
            "fconv3": conv_entry(32, num_classes, 3, bias=True, bn=False)}


def dsma_forward(p, x_nchw):
    x = jnp.transpose(x_nchw, (0, 2, 3, 1)).astype(ADT)     # NCHW -> NHWC, bf16
    r = p["resnet"]
    h = conv2d(x, r["conv1"], stride=2, padding=3, act="relu")   # firstconv+bn+relu
    h = maxpool2d(h, k=3, stride=2, padding=1)
    feats = []
    for blocks in r["layers"]:
        for blk in blocks:
            h = basicblock(blk, h)
        feats.append(h)
    e1, e2, e3, e4 = feats

    m2 = gpg_forward(p["mce2"], (e1, e2, e3, e4))
    m3 = gpg_forward(p["mce3"], (e2, e3, e4))
    m4 = gpg_forward(p["mce4"], (e3, e4))

    e4a = dmsa_forward(p["dmsa"], e4)

    d4 = decoder(p["dec4"], e4a) + m4
    d3 = decoder(p["dec3"], d4) + m3
    d2 = decoder(p["dec2"], d3) + m2
    d1 = decoder(p["dec1"], d2)

    out = conv_transpose2d(d1, p["fdeconv"], stride=2, padding=1,
                           output_padding=0, act="relu")
    out = conv2d(out, p["fconv2"], padding=1, act="relu")
    out = conv2d(out, p["fconv3"], padding=1, act="sigmoid")
    return jnp.transpose(out, (0, 3, 1, 2)).astype(jnp.float32)   # back to NCHW


if __name__ == "__main__":
    key = jax.random.PRNGKey(0)
    x = jax.random.normal(key, (2, 3, 64, 64), jnp.float32)
    params = make_dsma(num_classes=1)
    out = dsma_forward(params, x)
    out = jax.block_until_ready(out)
    assert out.shape == (2, 1, 64, 64), out.shape
    assert bool(jnp.all(jnp.isfinite(out)))
    print("KERNEL_OK")
</pallas_src>

<mosaic_0001>
module attributes {stable_mosaic.version = 11 : i64} {
  func.func @_mm_affine_act_kernel(%arg0: i32, %arg1: i32, %arg2: i32, %arg3: memref<256x147xbf16, #tpu.memory_space<vmem>>, %arg4: memref<147x64xbf16, #tpu.memory_space<vmem>>, %arg5: memref<1x64xf32, #tpu.memory_space<vmem>>, %arg6: memref<1x64xf32, #tpu.memory_space<vmem>>, %arg7: memref<256x64xbf16, #tpu.memory_space<vmem>>, %arg8: memref<256x64xf32, #tpu.memory_space<vmem>>) attributes {dimension_semantics = [#tpu.dimension_semantics<parallel>, #tpu.dimension_semantics<parallel>, #tpu.dimension_semantics<arbitrary>], iteration_bounds = array<i64: 8, 1, 1>, scalar_prefetch = 0 : i64, scratch_operands = 1 : i64, tpu.core_type = #tpu.core_type<tc>, window_params = [{transform_indices = @transform_0, window_bounds = array<i64: 256, 147>}, {transform_indices = @transform_1, window_bounds = array<i64: 147, 64>}, {transform_indices = @transform_2, window_bounds = array<i64: 1, 64>}, {transform_indices = @transform_3, window_bounds = array<i64: 1, 64>}, {transform_indices = @transform_4, window_bounds = array<i64: 256, 64>}]} {
    %c0_i32 = arith.constant 0 : i32
    %0 = arith.cmpi eq, %arg2, %c0_i32 : i32
    %1 = arith.extui %0 : i1 to i32
    %c0_i32_0 = arith.constant 0 : i32
    %2 = arith.cmpi ne, %1, %c0_i32_0 : i32
    scf.if %2 {
      %cst_10 = arith.constant 0.000000e+00 : f32
      %12 = vector.broadcast %cst_10 : f32 to vector<256x64xf32>
      %c0_11 = arith.constant 0 : index
      %c0_12 = arith.constant 0 : index
      %13 = vector.load %arg8[%c0_11, %c0_12] : memref<256x64xf32, #tpu.memory_space<vmem>>, vector<256x64xf32>
      tpu.vector_store %arg8[%c0_11, %c0_12], %12 {strides = array<i32>} : memref<256x64xf32, #tpu.memory_space<vmem>>, vector<256x64xf32>,
    } else {
    }
    %c0 = arith.constant 0 : index
    %c0_1 = arith.constant 0 : index
    %3 = vector.load %arg8[%c0, %c0_1] : memref<256x64xf32, #tpu.memory_space<vmem>>, vector<256x64xf32>
    %c0_2 = arith.constant 0 : index
    %c0_3 = arith.constant 0 : index
    %4 = vector.load %arg3[%c0_2, %c0_3] : memref<256x147xbf16, #tpu.memory_space<vmem>>, vector<256x147xbf16>
    %c0_4 = arith.constant 0 : index
    %c0_5 = arith.constant 0 : index
    %5 = vector.load %arg4[%c0_4, %c0_5] : memref<147x64xbf16, #tpu.memory_space<vmem>>, vector<147x64xbf16>
    %cst = arith.constant dense<0.000000e+00> : vector<256x64xf32>
    %6 = tpu.matmul %4, %5, %cst {dimension_numbers = #tpu.dot_dimension_numbers<[1], [0], [0], [1], [0, 0, 1, 1], [], []>} : vector<256x147xbf16>, vector<147x64xbf16>, vector<256x64xf32> -> vector<256x64xf32>
    %7 = arith.addf %3, %6 : vector<256x64xf32>
    %c0_6 = arith.constant 0 : index
    %c0_7 = arith.constant 0 : index
    %8 = vector.load %arg8[%c0_6, %c0_7] : memref<256x64xf32, #tpu.memory_space<vmem>>, vector<256x64xf32>
    tpu.vector_store %arg8[%c0_6, %c0_7], %7 {strides = array<i32>} : memref<256x64xf32, #tpu.memory_space<vmem>>, vector<256x64xf32>,
    %c0_i32_8 = arith.constant 0 : i32
    %9 = arith.cmpi eq, %arg2, %c0_i32_8 : i32
    %10 = arith.extui %9 : i1 to i32
    %c0_i32_9 = arith.constant 0 : i32
    %11 = arith.cmpi ne, %10, %c0_i32_9 : i32
    scf.if %11 {
      %c0_10 = arith.constant 0 : index
      %c0_11 = arith.constant 0 : index
      %12 = vector.load %arg8[%c0_10, %c0_11] : memref<256x64xf32, #tpu.memory_space<vmem>>, vector<256x64xf32>
      %c0_12 = arith.constant 0 : index
      %c0_13 = arith.constant 0 : index
      %13 = vector.load %arg5[%c0_12, %c0_13] : memref<1x64xf32, #tpu.memory_space<vmem>>, vector<1x64xf32>
      %14 = vector.broadcast %13 : vector<1x64xf32> to vector<256x64xf32>
      %15 = arith.mulf %12, %14 : vector<256x64xf32>
      %c0_14 = arith.constant 0 : index
      %c0_15 = arith.constant 0 : index
      %16 = vector.load %arg6[%c0_14, %c0_15] : memref<1x64xf32, #tpu.memory_space<vmem>>, vector<1x64xf32>
      %17 = vector.broadcast %16 : vector<1x64xf32> to vector<256x64xf32>
      %18 = arith.addf %15, %17 : vector<256x64xf32>
      %cst_16 = arith.constant 0.000000e+00 : f32
      %19 = vector.broadcast %cst_16 : f32 to vector<256x64xf32>
      %20 = arith.maximumf %18, %19 : vector<256x64xf32>
      %21 = arith.truncf %20 : vector<256x64xf32> to vector<256x64xbf16>
      %c0_17 = arith.constant 0 : index
      %c0_18 = arith.constant 0 : index
      %22 = vector.load %arg7[%c0_17, %c0_18] : memref<256x64xbf16, #tpu.memory_space<vmem>>, vector<256x64xbf16>
      tpu.vector_store %arg7[%c0_17, %c0_18], %21 {strides = array<i32>} : memref<256x64xbf16, #tpu.memory_space<vmem>>, vector<256x64xbf16>,
    } else {
    }
    return
  }
  func.func @transform_0(%arg0: i32, %arg1: i32, %arg2: i32) -> (i32, i32) {
    %c0_i32 = arith.constant 0 : i32
    return %arg0, %arg2 : i32, i32
  }
  func.func @transform_1(%arg0: i32, %arg1: i32, %arg2: i32) -> (i32, i32) {
    %c0_i32 = arith.constant 0 : i32
    return %arg2, %arg1 : i32, i32
  }
  func.func @transform_2(%arg0: i32, %arg1: i32, %arg2: i32) -> (i32, i32) {
    %c0_i32 = arith.constant 0 : i32
    %c0_i32_0 = arith.constant 0 : i32
    return %c0_i32, %arg1 : i32, i32
  }
  func.func @transform_3(%arg0: i32, %arg1: i32, %arg2: i32) -> (i32, i32) {
    %c0_i32 = arith.constant 0 : i32
    %c0_i32_0 = arith.constant 0 : i32
    return %c0_i32, %arg1 : i32, i32
  }
  func.func @transform_4(%arg0: i32, %arg1: i32, %arg2: i32) -> (i32, i32) {
    %c0_i32 = arith.constant 0 : i32
    return %arg0, %arg1 : i32, i32
  }
}

</mosaic_0001>

<bundles_post_ra>
// kernel: _conv2d_impl.1
= control target key start
LH: loop header
LB: loop body
LE: loop exit
PB: predicated region body
PF: predicated region fallthrough
CT: control target
= control target key end

     0   :  { %9 = vsyncpa [#allocation4], 0  ;;  %s2117_s0 = inlined_call_operand.vmem [shape: bf16[2048,147], index: 0, kind: input, shape index: {}]   ;;  %s2118_s1 = inlined_call_operand.vmem [shape: bf16[147,64], index: 1, kind: input, shape index: {}]   ;;  %s2119_s2 = inlined_call_operand.vmem [shape: f32[1,64], index: 2, kind: input, shape index: {}]   ;;  %s2120_s3 = inlined_call_operand.vmem [shape: f32[1,64], index: 3, kind: input, shape index: {}]   ;;  %s2121_s4 = inlined_call_operand.hbm [shape: bf16[2048,64], index: 4, kind: output, shape index: {}]  }
   0x1   :  { %11 = vsyncpa [#allocation4 + $0x1], 0  ;;  %s1685_s15 = smov 0   ;;  %s1687_s16 = smov 0  }
   0x2   :  { %s1689_s17 = smov 0   ;;  %s1691_s18 = smov 0  }
   0x3   :  { %s1693_s19 = smov 0   ;;  %s1695_s20 = smov 0  }
   0x4 LB: > { %s1265_s21 = sadd.s32 4294967295, %s1654_s20   ;;  %s1266_s22 = sadd.s32 4294967294, %s1654_s20   ;;  %s1654_s20 = sphi %s1695_s20, %s17_s20   ;;  %s1650_s19 = sphi %s1693_s19, %s2128_s19   ;;  %s1646_s18 = sphi %s1691_s18, %s2127_s18   ;;  %s1642_s17 = sphi %s1689_s17, %s2126_s17   ;;  %s1638_s16 = sphi %s1687_s16, %s2125_s16   ;;  %s1634_s15 = sphi %s1685_s15, %s2124_s15  }
   0x5   : > { %s36_s23 = sadd.s32 1, %s1650_s19  ;;  %s153_s24 = sadd.s32 1, %s1642_s17 }
   0x6   : > { %p38_p0 = scmp.ge.s32.totalorder %s36_s23, 8  ;;  %p163_p1 = scmp.ne.s32.totalorder %s1642_s17, %s1638_s16 }
   0x7   : > { %p164_p2 = scmp.eq.s32.totalorder %s1265_s21, 7  ;;  %p169_p3 = scmp.ne.s32.totalorder %s1638_s16, %s1634_s15 }
   0x8   : > { %s2130_s23 = smov (%p38_p0, %s36_s23), 0  ;;  %p170_p5 = scmp.eq.s32.totalorder %s1266_s22, 7 }
   0x9   : > { %p1725_p4 = por %p164_p2, %p163_p1  ;;  %s148_s26 = ssub.s32 %s1650_s19, %s2130_s23 }
   0xa   : > { %p1272_p6 = scmp.ge.s32.totalorder %s1654_s20, 1  ;;  %p151_p7 = scmp.eq.s32.totalorder %s148_s26, 0 }
   0xb   : > { %p1732_p8 = por %p170_p5, %p169_p3  ;;  %p227_p9 = scmp.lt.s32.totalorder %s1654_s20, 9 }
   0xc   : > { %s1738_s28 = scalar_select %p151_p7, %s1642_s17, %s153_s24  }
   0xd   : > { %p228_p10 = pnand %p1272_p6, %p227_p9 }
   0xe   : > { %s1274_s7 = sshll.u32 (!%p228_p10), %s1646_s18, 5  ;;  %s269_s22 = sand.u32 (!%p228_p10), 1, %s1638_s16  }
   0xf   : > { %231 = sbr.rel (%p228_p10) target bundleno = 329 (0x149), region = 36  ;;  %p274_p11 = scmp.lt.s32.totalorder (!%p228_p10), %s1274_s7, 255 }
  0x10   : > { %s1504_s29 = sshll.u32 (!%p228_p10), %s1646_s18, 7  ;;  %s1126_s8 = scalar_lea.sflag (!%p228_p10), [#allocation4], %s269_s22 }
  0x11   : > { %s1138_s6 = scalar_lea.hbm (!%p228_p10), %s2121_s4, %s1504_s29  ;;  %s1596_s13 = scalar_lea.hbm (!%p228_p10), %s2121_s4, 1024 }
  0x14   : > { %v1502_v0 = vld [vmem:[%s2118_s1 + $0x38] sm:$0xff]  ;;  %v420_v1 = vld [vmem:[%s2118_s1 + $0x48] sm:$0x3]  ;;  %vm671_vm0 = vcmask 1040384   ;;  %vm672_vm1 = vcmask 1041408   ;;  %v1501_v3 = vld [vmem:[%s2118_s1 + $0x30] sm:$0xff] }
  0x15   : > { %v602_v2 = vunpack.c.l.b16 %v420_v1  ;;  %678 = vmatpush.bf16.msra.mxu0 %v1502_v0  ;;  %1505 = vmatpush.bf16.msra.mxu2 %v1502_v0  ;;  %v1656_v4 = vmov 65535   ;;  %s2132_s7 = smov (!%p274_p11, %s1274_s7), 255  ;;  %v1500_v9 = vld [vmem:[%s2118_s1 + $0x28] sm:$0xff]  ;;  %v1503_v10 = vld [vmem:[%s2118_s1 + $0x40] sm:$0xff]  ;;  %vm622_vm2 = vcmask 154624   ;;  %v1498_v18 = vld [vmem:[%s2118_s1 + $0x18] sm:$0xff] }
  0x16   : > { %v673_v5 = vsel %vm671_vm0, 4294967295, %v1656_v4  ;;  %s1462_s12 = sshll.u32 %s2132_s7, 3  ;;  %v1499_v14 = vld [vmem:[%s2118_s1 + $0x20] sm:$0xff]  ;;  %v1497_v19 = vld [vmem:[%s2118_s1 + $0x10] sm:$0xff]  ;;  %v1496_v20 = vld [vmem:[%s2118_s1 + $0x8] sm:$0xff]  ;;  %vm305_vm3 = vcmask 523264  }
  0x17   : > { %v612_v6 = vpack.c.b16 %v602_v2, %v602_v2  ;;  %v674_v7 = vsel %vm672_vm1, %v673_v5, 0  ;;  %s1759_s24 = scalar_lea.vmem %s2117_s0, %s1462_s12  ;;  %v1495_v26 = vld [vmem:[%s2118_s1] sm:$0xff]  ;;  %vm1092_vm4 = vcmask 519168   ;;  %s1141_s7 = sshll.u32 %s1138_s6, 4  ;;  %s1142_s7 = int_to_ptr.hbm [resolvable:$true] %s1141_s7 }
  0x18   : > { %v1463_v11 = vld [vmem:[%s1759_s24 + $0x4] sm:$0xf]  ;;  %v1281_v12 = vld [vmem:[%s1759_s24 + $0x8] sm:$0xf0]  ;;  %v1481_v15 = vld [vmem:[%s1759_s24 + $0x94] sm:$0xf] }
  0x19   : > { %v676_v8 = vand.u32 %v674_v7, %v612_v6  ;;  %679 = vmatpush.bf16.msra.mxu0 %v1501_v3  ;;  %1506 = vmatpush.bf16.msra.mxu2 %v1501_v3  ;;  %v1284_v13 = vor.u32 %v1463_v11, %v1281_v12  ;;  %v1353_v16 = vld [vmem:[%s1759_s24 + $0x98] sm:$0xf0]  ;;  %v1465_v21 = vld [vmem:[%s1759_s24 + $0x14] sm:$0xf]  ;;  %v1483_v23 = vld [vmem:[%s1759_s24 + $0xa4] sm:$0xf] }
  0x1a   : > { %v1356_v17 = vor.u32 %v1481_v15, %v1353_v16  ;;  %v1289_v22 = vld [vmem:[%s1759_s24 + $0x18] sm:$0xf0]  ;;  %v1361_v24 = vld [vmem:[%s1759_s24 + $0xa8] sm:$0xf0]  ;;  %v1279_v27 = vld [vmem:[%s1759_s24] sm:$0xf] }
  0x1b   : > { %773 = vmatpush.bf16.msra.mxu1 %v676_v8  ;;  %1513 = vmatpush.bf16.msra.mxu3 %v676_v8  ;;  %v1292_v25 = vor.u32 %v1465_v21, %v1289_v22  ;;  %v1464_v28 = vld [vmem:[%s1759_s24 + $0x4] sm:$0xf0]  ;;  %v1343_v29 = vld [vmem:[%s1759_s24 + $0x80] sm:$0xf]  ;;  %v1364_v31 = vor.u32 %v1483_v23, %v1361_v24  ;;  %v1467_v34 = vld [vmem:[%s1759_s24 + $0x24] sm:$0xf] }
  0x1c   : > { %v1480_v30 = vld [vmem:[%s1759_s24 + $0x84] sm:$0xf0]  ;;  %v1280_v32 = vor.u32 %v1464_v28, %v1279_v27  ;;  %v1297_v35 = vld [vmem:[%s1759_s24 + $0x28] sm:$0xf0]  ;;  %v1485_v36 = vld [vmem:[%s1759_s24 + $0xb4] sm:$0xf] }
  0x1d   : > { %680 = vmatpush.bf16.msra.mxu0 %v1500_v9  ;;  %1507 = vmatpush.bf16.msra.mxu2 %v1500_v9  ;;  %v1344_v33 = vor.u32 %v1480_v30, %v1343_v29  ;;  %v1369_v37 = vld [vmem:[%s1759_s24 + $0xb8] sm:$0xf0]  ;;  %v1300_v38 = vor.u32 %v1467_v34, %v1297_v35  ;;  %v1287_v39 = vld [vmem:[%s1759_s24 + $0x10] sm:$0xf]  ;;  %v1466_v40 = vld [vmem:[%s1759_s24 + $0x14] sm:$0xf0] }
  0x1e   : > { %v1351_v41 = vld [vmem:[%s1759_s24 + $0x90] sm:$0xf]  ;;  %v1482_v42 = vld [vmem:[%s1759_s24 + $0x94] sm:$0xf0]  ;;  %v1372_v43 = vor.u32 %v1485_v36, %v1369_v37  ;;  %v1288_v44 = vor.u32 %v1466_v40, %v1287_v39  ;;  %v1469_v46 = vld [vmem:[%s1759_s24 + $0x34] sm:$0xf] }
  0x1f   : > { %774 = vmatpush.bf16.msra.mxu1 %v1503_v10  ;;  %1514 = vmatpush.bf16.msra.mxu3 %v1503_v10  ;;  %v1352_v45 = vor.u32 %v1482_v42, %v1351_v41  ;;  %v1305_v47 = vld [vmem:[%s1759_s24 + $0x38] sm:$0xf0]  ;;  %v1487_v48 = vld [vmem:[%s1759_s24 + $0xc4] sm:$0xf]  ;;  %v1377_v49 = vld [vmem:[%s1759_s24 + $0xc8] sm:$0xf0] }
  0x20   : > { %v1308_v50 = vor.u32 %v1469_v46, %v1305_v47  ;;  %v1295_v51 = vld [vmem:[%s1759_s24 + $0x20] sm:$0xf]  ;;  %v1468_v52 = vld [vmem:[%s1759_s24 + $0x24] sm:$0xf0]  ;;  %v1380_v55 = vor.u32 %v1487_v48, %v1377_v49  ;;  %v1471_v58 = vld [vmem:[%s1759_s24 + $0x44] sm:$0xf] }
  0x21   : > { %681 = vmatpush.bf16.msra.mxu0 %v1499_v14  ;;  %1508 = vmatpush.bf16.msra.mxu2 %v1499_v14  ;;  %v1359_v53 = vld [vmem:[%s1759_s24 + $0xa0] sm:$0xf]  ;;  %v1484_v54 = vld [vmem:[%s1759_s24 + $0xa4] sm:$0xf0]  ;;  %v1296_v56 = vor.u32 %v1468_v52, %v1295_v51  ;;  %v1313_v59 = vld [vmem:[%s1759_s24 + $0x48] sm:$0xf0] }
  0x22   : > { %1441 = vmatmul.msk.bf16.vlgmr.msra.gmra.mxu1 %vm622_vm2, %v1284_v13  ;;  %1450 = vmatmul.msk.bf16.vlgmr.msra.gmra.mxu3 %vm622_vm2, %v1356_v17  ;;  %v1360_v57 = vor.u32 %v1484_v54, %v1359_v53  ;;  %v1489_v60 = vld [vmem:[%s1759_s24 + $0xd4] sm:$0xf]  ;;  %v1385_v61 = vld [vmem:[%s1759_s24 + $0xd8] sm:$0xf0]  ;;  %v1316_v62 = vor.u32 %v1471_v58, %v1313_v59  ;;  %v1303_v63 = vld [vmem:[%s1759_s24 + $0x30] sm:$0xf] }
  0x23   : > { %v1470_v0 = vld [vmem:[%s1759_s24 + $0x34] sm:$0xf0]  ;;  %v1367_v1 = vld [vmem:[%s1759_s24 + $0xb0] sm:$0xf]  ;;  %v1388_v3 = vor.u32 %v1489_v60, %v1385_v61  ;;  %v1473_v6 = vld [vmem:[%s1759_s24 + $0x54] sm:$0xf] }
  0x24   : > { %v1486_v2 = vld [vmem:[%s1759_s24 + $0xb4] sm:$0xf0]  ;;  %v1304_v4 = vor.u32 %v1470_v0, %v1303_v63  ;;  %v1321_v7 = vld [vmem:[%s1759_s24 + $0x58] sm:$0xf0]  ;;  %v1491_v8 = vld [vmem:[%s1759_s24 + $0xe4] sm:$0xf] }
  0x25   : > { %682 = vmatpush.bf16.msra.mxu0 %v1498_v18  ;;  %1509 = vmatpush.bf16.msra.mxu2 %v1498_v18  ;;  %v1368_v5 = vor.u32 %v1486_v2, %v1367_v1  ;;  %v1393_v9 = vld [vmem:[%s1759_s24 + $0xe8] sm:$0xf0]  ;;  %v1324_v10 = vor.u32 %v1473_v6, %v1321_v7  ;;  %v1311_v11 = vld [vmem:[%s1759_s24 + $0x40] sm:$0xf]  ;;  %v1472_v12 = vld [vmem:[%s1759_s24 + $0x44] sm:$0xf0] }
  0x26   : > { %v1375_v13 = vld [vmem:[%s1759_s24 + $0xc0] sm:$0xf]  ;;  %v1488_v14 = vld [vmem:[%s1759_s24 + $0xc4] sm:$0xf0]  ;;  %v1396_v15 = vor.u32 %v1491_v8, %v1393_v9  ;;  %v1312_v16 = vor.u32 %v1472_v12, %v1311_v11  ;;  %v1475_v18 = vld [vmem:[%s1759_s24 + $0x64] sm:$0xf] }
  0x27   : > { %v1376_v17 = vor.u32 %v1488_v14, %v1375_v13  ;;  %v1401_v21 = vld [vmem:[%s1759_s24 + $0xf8] sm:$0xf0]  ;;  %v1319_v23 = vld [vmem:[%s1759_s24 + $0x50] sm:$0xf]  ;;  %v1474_v24 = vld [vmem:[%s1759_s24 + $0x54] sm:$0xf0] }
  0x28   : > { %v1320_v28 = vor.u32 %v1474_v24, %v1319_v23  ;;  %v1477_v30 = vld [vmem:[%s1759_s24 + $0x74] sm:$0xf]  ;;  %v1476_v34 = vld [vmem:[%s1759_s24 + $0x64] sm:$0xf0]  ;;  %v1657_v35 = vmov 0.0   ;;  %s1590_s9 = sshra.s32 %s1142_s7, 4  ;;  %s1591_s9 = int_to_ptr.hbm [resolvable:$true] %s1590_s9 }
  0x29   : > { %683 = vmatpush.bf16.msra.mxu0 %v1497_v19  ;;  %1510 = vmatpush.bf16.msra.mxu2 %v1497_v19  ;;  %v1329_v19 = vld [vmem:[%s1759_s24 + $0x68] sm:$0xf0]  ;;  %306 = vst.msk [vmem:[#allocation2] sm:$0xff] %vm305_vm3, %v1657_v35  ;;  %v1391_v36 = vld [vmem:[%s1759_s24 + $0xe0] sm:$0xf]  ;;  %s1592_s10 = scalar_lea.hbm %s1591_s9, 128  ;;  %p1597_p1 = scmp.lt.s32.totalorder %s1591_s9, %s2121_s4 }
  0x2a   : > { %v1332_v22 = vor.u32 %v1475_v18, %v1329_v19  ;;  %v1492_v37 = vld [vmem:[%s1759_s24 + $0xe4] sm:$0xf0]  ;;  %307 = vst.msk [vmem:[#allocation2 + $0x8] sm:$0xff] %vm305_vm3, %v1657_v35  ;;  %v1479_v40 = vld [vmem:[%s1759_s24 + $0x84] sm:$0xf]  ;;  %p1593_p12 = scmp.ne.s32.totalorder %s1591_s9, %s1592_s10  ;;  %p1598_p2 = scmp.lt.s32.totalorder %s1596_s13, %s1592_s10 }
  0x2b   : > { %308 = vst.msk [vmem:[#allocation2 + $0x10] sm:$0xff] %vm305_vm3, %v1657_v35  ;;  %v1392_v39 = vor.u32 %v1492_v37, %v1391_v36  ;;  %v1345_v41 = vld [vmem:[%s1759_s24 + $0x88] sm:$0xf0]  ;;  %v1399_v46 = vld [vmem:[%s1759_s24 + $0xf0] sm:$0xf] }
  0x2c   : > { %309 = vst.msk [vmem:[#allocation2 + $0x18] sm:$0xff] %vm305_vm3, %v1657_v35  ;;  %v1348_v42 = vor.u32 %v1479_v40, %v1345_v41  ;;  %v1494_v47 = vld [vmem:[%s1759_s24 + $0xf4] sm:$0xf0]  ;;  %v1899_v0 = vld [vmem:[%s2120_s3] ss:$0 sm:$0xff]  ;;  %p1594_p13 = pnand %p1593_p12, %p1725_p4  ;;  %p1599_p3 = por %p1598_p2, %p1597_p1 }
  0x2d   : > { %684 = vmatpush.bf16.msra.mxu0 %v1496_v20  ;;  %1511 = vmatpush.bf16.msra.mxu2 %v1496_v20  ;;  %v1493_v20 = vld [vmem:[%s1759_s24 + $0xf4] sm:$0xf]  ;;  %310 = vst.msk [vmem:[#allocation2 + $0x20] sm:$0xff] %vm305_vm3, %v1657_v35  ;;  %v1400_v49 = vor.u32 %v1494_v47, %v1399_v46 }
  0x2e   : > { %v1404_v27 = vor.u32 %v1493_v20, %v1401_v21  ;;  %311 = vst.msk [vmem:[#allocation2 + $0x28] sm:$0xff] %vm305_vm3, %v1657_v35  ;;  %p1595_p0 = pneg %p1594_p13 }
  0x2f   : > { %312 = vst.msk [vmem:[#allocation2 + $0x30] sm:$0xff] %vm305_vm3, %v1657_v35 }
  0x30   : > { %313 = vst.msk [vmem:[#allocation2 + $0x38] sm:$0xff] %vm305_vm3, %v1657_v35  ;;  %v338_v53 = vld [vmem:[#allocation2] sm:$0xff]  ;;  %p1600_p5 = pnand %p1599_p3, %p1595_p0 }
  0x31   : > { %685 = vmatpush.bf16.msra.mxu0 %v1495_v26  ;;  %1512 = vmatpush.bf16.msra.mxu2 %v1495_v26  ;;  %v1490_v26 = vld [vmem:[%s1759_s24 + $0xd4] sm:$0xf0]  ;;  %314 = vst.msk [vmem:[#allocation2 + $0x40] sm:$0xff] %vm305_vm3, %v1657_v35  ;;  %v339_v60 = vld [vmem:[#allocation2 + $0x8] sm:$0xff] }
  0x32   : > { %1442 = vmatmul.msk.bf16.gmra.mxu1 %vm622_vm2, %v1292_v25  ;;  %1451 = vmatmul.msk.bf16.gmra.mxu3 %vm622_vm2, %v1364_v31  ;;  %v1383_v25 = vld [vmem:[%s1759_s24 + $0xd0] sm:$0xf]  ;;  %v1337_v31 = vld [vmem:[%s1759_s24 + $0x78] sm:$0xf0]  ;;  %315 = vst.msk [vmem:[#allocation2 + $0x48] sm:$0xff] %vm305_vm3, %v1657_v35 }
  0x33   : > { %v1384_v29 = vor.u32 %v1490_v26, %v1383_v25  ;;  %316 = vst.msk [vmem:[#allocation2 + $0x50] sm:$0xff] %vm305_vm3, %v1657_v35  ;;  %v340_v7 = vld [vmem:[#allocation2 + $0x10] sm:$0xff]  ;;  %v341_v21 = vld [vmem:[#allocation2 + $0x18] sm:$0xff] }
  0x34   : > { %686 = vmatmul.bf16.vlgmr.msra.gmra.mxu0 %v1280_v32  ;;  %726 = vmatmul.bf16.vlgmr.msra.gmra.mxu2 %v1344_v33  ;;  %v1340_v32 = vor.u32 %v1477_v30, %v1337_v31  ;;  %v1327_v33 = vld [vmem:[%s1759_s24 + $0x60] sm:$0xf]  ;;  %317 = vst.msk [vmem:[#allocation2 + $0x58] sm:$0xff] %vm305_vm3, %v1657_v35 }
  0x35   : > { %318 = vst.msk [vmem:[#allocation2 + $0x60] sm:$0xff] %vm305_vm3, %v1657_v35  ;;  %v342_v36 = vld [vmem:[#allocation2 + $0x20] sm:$0xff] }
  0x36   : > { %319 = vst.msk [vmem:[#allocation2 + $0x68] sm:$0xff] %vm305_vm3, %v1657_v35 }
  0x37   : > { %320 = vst.msk [vmem:[#allocation2 + $0x70] sm:$0xff] %vm305_vm3, %v1657_v35 }
  0x38   : > { %321 = vst.msk [vmem:[#allocation2 + $0x78] sm:$0xff] %vm305_vm3, %v1657_v35 }
  0x39   : > { %322 = vst.msk [vmem:[#allocation2 + $0x80] sm:$0xff] %vm305_vm3, %v1657_v35 }
  0x3a   : > { %323 = vst.msk [vmem:[#allocation2 + $0x88] sm:$0xff] %vm305_vm3, %v1657_v35 }
  0x3b   : > { %324 = vst.msk [vmem:[#allocation2 + $0x90] sm:$0xff] %vm305_vm3, %v1657_v35 }
  0x3c   : > { %325 = vst.msk [vmem:[#allocation2 + $0x98] sm:$0xff] %vm305_vm3, %v1657_v35 }
  0x3d   : > { %326 = vst.msk [vmem:[#allocation2 + $0xa0] sm:$0xff] %vm305_vm3, %v1657_v35 }
  0x3e   : > { %327 = vst.msk [vmem:[#allocation2 + $0xa8] sm:$0xff] %vm305_vm3, %v1657_v35 }
  0x3f   : > { %328 = vst.msk [vmem:[#allocation2 + $0xb0] sm:$0xff] %vm305_vm3, %v1657_v35 }
  0x40   : > { %329 = vst.msk [vmem:[#allocation2 + $0xb8] sm:$0xff] %vm305_vm3, %v1657_v35 }
  0x41   : > { %330 = vst.msk [vmem:[#allocation2 + $0xc0] sm:$0xff] %vm305_vm3, %v1657_v35 }
  0x42   : > { %1443 = vmatmul.msk.bf16.gmra.mxu1 %vm622_vm2, %v1300_v38  ;;  %1452 = vmatmul.msk.bf16.gmra.mxu3 %vm622_vm2, %v1372_v43  ;;  %v1328_v38 = vor.u32 %v1476_v34, %v1327_v33  ;;  %v1335_v43 = vld [vmem:[%s1759_s24 + $0x70] sm:$0xf]  ;;  %331 = vst.msk [vmem:[#allocation2 + $0xc8] sm:$0xff] %vm305_vm3, %v1657_v35 }
  0x43   : > { %332 = vst.msk [vmem:[#allocation2 + $0xd0] sm:$0xff] %vm305_vm3, %v1657_v35  ;;  %v356_v18 = vld [vmem:[#allocation2 + $0x90] sm:$0xff] }
  0x44   : > { %691 = vmatmul.bf16.gmra.mxu0 %v1288_v44  ;;  %731 = vmatmul.bf16.gmra.mxu2 %v1352_v45  ;;  %v1478_v44 = vld [vmem:[%s1759_s24 + $0x74] sm:$0xf0]  ;;  %333 = vst.msk [vmem:[#allocation2 + $0xd8] sm:$0xff] %vm305_vm3, %v1657_v35  ;;  %s1273_s24 = sshll.u32 %s269_s22, 7 }
  0x45   : > { %v1336_v48 = vor.u32 %v1478_v44, %v1335_v43  ;;  %334 = vst.msk [vmem:[#allocation2 + $0xe0] sm:$0xff] %vm305_vm3, %v1657_v35  ;;  %s1909_s26 = scalar_lea.vmem [#allocation3], %s1273_s24 }
  0x46   : > { %335 = vst.msk [vmem:[#allocation2 + $0xe8] sm:$0xff] %vm305_vm3, %v1657_v35  ;;  %s1139_s18 = sshll.u32 %s1909_s26, 4  ;;  %s1140_s18 = int_to_ptr.vmem [resolvable:$true] %s1139_s18 }
  0x47   : > { %336 = vst.msk [vmem:[#allocation2 + $0xf0] sm:$0xff] %vm305_vm3, %v1657_v35 }
  0x48   : > { %337 = vst.msk [vmem:[#allocation2 + $0xf8] sm:$0xff] %vm305_vm3, %v1657_v35 }
  0x52   : > { %1444 = vmatmul.msk.bf16.gmra.mxu1 %vm622_vm2, %v1308_v50  ;;  %1453 = vmatmul.msk.bf16.gmra.mxu3 %vm622_vm2, %v1380_v55 }
  0x54   : > { %696 = vmatmul.bf16.gmra.mxu0 %v1296_v56  ;;  %736 = vmatmul.bf16.gmra.mxu2 %v1360_v57 }
  0x62   : > { %1445 = vmatmul.msk.bf16.gmra.mxu1 %vm622_vm2, %v1316_v62  ;;  %1454 = vmatmul.msk.bf16.gmra.mxu3 %vm622_vm2, %v1388_v3  ;;  %v1894_v62 = vld [vmem:[%s2119_s2] ss:$0 sm:$0xff] }
  0x64   : > { %701 = vmatmul.bf16.gmra.mxu0 %v1304_v4  ;;  %741 = vmatmul.bf16.gmra.mxu2 %v1368_v5 }
  0x72   : > { %1446 = vmatmul.msk.bf16.gmra.mxu1 %vm622_vm2, %v1324_v10  ;;  %1455 = vmatmul.msk.bf16.gmra.mxu3 %vm622_vm2, %v1396_v15 }
  0x74   : > { %706 = vmatmul.bf16.gmra.mxu0 %v1312_v16  ;;  %746 = vmatmul.bf16.gmra.mxu2 %v1376_v17 }
  0x82   : > { %1447 = vmatmul.msk.bf16.gmra.mxu1 %vm622_vm2, %v1332_v22  ;;  %1456 = vmatmul.msk.bf16.gmra.mxu3 %vm622_vm2, %v1404_v27 }
  0x84   : > { %711 = vmatmul.bf16.gmra.mxu0 %v1320_v28  ;;  %751 = vmatmul.bf16.gmra.mxu2 %v1384_v29 }
  0x92   : > { %1448 = vmatmul.msk.bf16.gmra.mxu1 %vm622_vm2, %v1340_v32  ;;  %v357_v32 = vld [vmem:[#allocation2 + $0x98] sm:$0xff] }
  0x94   : > { %716 = vmatmul.bf16.gmra.mxu0 %v1328_v38  ;;  %756 = vmatmul.bf16.gmra.mxu2 %v1392_v39 }
  0x9f   : > { %v776_v45 = vpop.f32.mrf.mxu1 }
  0xa2   : > { %1449 = vmatmul.msk.bf16.gmra.mxu1 %vm622_vm2, %v1348_v42 }
  0xa4   : > { %721 = vmatmul.bf16.gmra.mxu0 %v1336_v48  ;;  %761 = vmatmul.bf16.gmra.mxu2 %v1400_v49 }
  0xa5   : > { %v821_v52 = vpop.f32.mrf.mxu3 }
  0xa7   : > { %v778_v50 = vpop.f32.mrf.mxu1 }
  0xad   : > { %v823_v59 = vpop.f32.mrf.mxu3 }
  0xaf   : > { %v781_v51 = vpop.f32.mrf.mxu1 }
  0xb1   : > { %v687_v54 = vpop.f32.mrf.mxu0 }
  0xb2   : > { %v777_v55 = vadd.f32 %v776_v45, %v687_v54 }
  0xb4   : > { %v856_v56 = vadd.f32 %v777_v55, %v338_v53  ;;  %v343_v55 = vld [vmem:[#allocation2 + $0x28] sm:$0xff] }
  0xb5   : > { %v826_v11 = vpop.f32.mrf.mxu3 }
  0xb6   : > { %889 = vst.msk [vmem:[#allocation2] sm:$0xff] %vm305_vm3, %v856_v56 }
  0xb7   : > { %v783_v57 = vpop.f32.mrf.mxu1  ;;  %v1889_v58 = vpop.f32.mrf.mxu2 }
  0xb9   : > { %v689_v61 = vpop.f32.mrf.mxu0 }
  0xba   : > { %v779_v63 = vadd.f32 %v778_v50, %v689_v61  ;;  %v358_v50 = vld [vmem:[#allocation2 + $0xa0] sm:$0xff] }
  0xbc   : > { %v857_v1 = vadd.f32 %v779_v63, %v339_v60 }
  0xbd   : > { %v924_v2 = vld [vmem:[#allocation2] sm:$0xff]  ;;  %v828_v28 = vpop.f32.mrf.mxu3 }
  0xbe   : > { %v960_v3 = vmul.f32 %v1894_v62, %v924_v2  ;;  %890 = vst.msk [vmem:[#allocation2 + $0x8] sm:$0xff] %vm305_vm3, %v857_v1 }
  0xbf   : > { %v786_v4 = vpop.f32.mrf.mxu1  ;;  %v1907_v6 = vpop.f32.mrf.mxu2 }
  0xc0   : > { %v996_v5 = vadd.f32 %v1899_v0, %v960_v3 }
  0xc1   : > { %v692_v8 = vpop.f32.mrf.mxu0 }
  0xc2   : > { %v1028_v9 = vmax.f32 %v996_v5, 0.0  ;;  %v782_v10 = vadd.f32 %v781_v51, %v692_v8 }
  0xc4   : > { %v1060_v12 = vpack.c.bf16 %v1028_v9, %v1028_v9  ;;  %v858_v13 = vadd.f32 %v782_v10, %v340_v7  ;;  %v359_v10 = vld [vmem:[#allocation2 + $0xa8] sm:$0xff] }
  0xc5   : > { %v925_v14 = vld [vmem:[#allocation2 + $0x8] sm:$0xff]  ;;  %v831_v47 = vpop.f32.mrf.mxu3 }
  0xc6   : > { %1093 = vst.msk [vmem:[%s1909_s26] sm:$0xf] %vm1092_vm4, %v1060_v12  ;;  %v961_v15 = vmul.f32 %v1894_v62, %v925_v14 }
  0xc7   : > { %v788_v16 = vpop.f32.mrf.mxu1  ;;  %891 = vst.msk [vmem:[#allocation2 + $0x10] sm:$0xff] %vm305_vm3, %v858_v13  ;;  %v732_v19 = vpop.f32.mrf.mxu2 }
  0xc8   : > { %v997_v17 = vadd.f32 %v1899_v0, %v961_v15  ;;  %v822_v20 = vadd.f32 %v821_v52, %v732_v19  ;;  %v344_v15 = vld [vmem:[#allocation2 + $0x30] sm:$0xff] }
  0xc9   : > { %v694_v22 = vpop.f32.mrf.mxu0 }
  0xca   : > { %v1029_v23 = vmax.f32 %v997_v17, 0.0  ;;  %v784_v24 = vadd.f32 %v783_v57, %v694_v22  ;;  %v874_v25 = vadd.f32 %v822_v20, %v356_v18 }
  0xcc   : > { %v1061_v26 = vpack.c.bf16 %v1029_v23, %v1029_v23  ;;  %v859_v27 = vadd.f32 %v784_v24, %v341_v21  ;;  %907 = vst.msk [vmem:[#allocation2 + $0x90] sm:$0xff] %vm305_vm3, %v874_v25 }
  0xcd   : > { %v833_v12 = vpop.f32.mrf.mxu3 }
  0xce   : > { %1094 = vst.msk [vmem:[%s1909_s26 + $0x4] sm:$0xf] %vm1092_vm4, %v1061_v26  ;;  %v926_v29 = vld [vmem:[#allocation2 + $0x10] sm:$0xff] }
  0xcf   : > { %v791_v30 = vpop.f32.mrf.mxu1  ;;  %v962_v31 = vmul.f32 %v1894_v62, %v926_v29  ;;  %892 = vst.msk [vmem:[#allocation2 + $0x18] sm:$0xff] %vm305_vm3, %v859_v27  ;;  %v734_v33 = vpop.f32.mrf.mxu2  ;;  %v360_v29 = vld [vmem:[#allocation2 + $0xb0] sm:$0xff] }
  0xd0   : > { %v824_v35 = vadd.f32 %v823_v59, %v734_v33 }
  0xd1   : > { %v998_v34 = vadd.f32 %v1899_v0, %v962_v31  ;;  %v697_v37 = vpop.f32.mrf.mxu0 }
  0xd2   : > { %v787_v38 = vadd.f32 %v786_v4, %v697_v37  ;;  %v875_v40 = vadd.f32 %v824_v35, %v357_v32  ;;  %v345_v32 = vld [vmem:[#allocation2 + $0x38] sm:$0xff] }
  0xd3   : > { %v1030_v39 = vmax.f32 %v998_v34, 0.0  ;;  %v942_v41 = vld [vmem:[#allocation2 + $0x90] sm:$0xff] }
  0xd4   : > { %v860_v42 = vadd.f32 %v787_v38, %v342_v36  ;;  %v978_v44 = vmul.f32 %v1894_v62, %v942_v41  ;;  %908 = vst.msk [vmem:[#allocation2 + $0x98] sm:$0xff] %vm305_vm3, %v875_v40 }
  0xd5   : > { %v1062_v43 = vpack.c.bf16 %v1030_v39, %v1030_v39  ;;  %v836_v37 = vpop.f32.mrf.mxu3 }
  0xd6   : > { %v927_v45 = vld [vmem:[#allocation2 + $0x18] sm:$0xff]  ;;  %893 = vst.msk [vmem:[#allocation2 + $0x20] sm:$0xff] %vm305_vm3, %v860_v42  ;;  %v1014_v48 = vadd.f32 %v1899_v0, %v978_v44 }
  0xd7   : > { %v793_v46 = vpop.f32.mrf.mxu1  ;;  %1095 = vst.msk [vmem:[%s1909_s26 + $0x8] sm:$0xf] %vm1092_vm4, %v1062_v43  ;;  %v963_v49 = vmul.f32 %v1894_v62, %v927_v45  ;;  %v737_v51 = vpop.f32.mrf.mxu2 }
  0xd8   : > { %v1046_v52 = vmax.f32 %v1014_v48, 0.0  ;;  %v827_v54 = vadd.f32 %v826_v11, %v737_v51  ;;  %v361_v48 = vld [vmem:[#allocation2 + $0xb8] sm:$0xff] }
  0xd9   : > { %v999_v53 = vadd.f32 %v1899_v0, %v963_v49  ;;  %v699_v56 = vpop.f32.mrf.mxu0 }
  0xda   : > { %v789_v57 = vadd.f32 %v788_v16, %v699_v56  ;;  %v1078_v59 = vpack.c.bf16 %v1046_v52, %v1046_v52  ;;  %v876_v61 = vadd.f32 %v827_v54, %v358_v50  ;;  %v346_v52 = vld [vmem:[#allocation2 + $0x40] sm:$0xff] }
  0xdb   : > { %v1031_v60 = vmax.f32 %v999_v53, 0.0  ;;  %v943_v63 = vld [vmem:[#allocation2 + $0x98] sm:$0xff] }
  0xdc   : > { %v861_v1 = vadd.f32 %v789_v57, %v343_v55  ;;  %1111 = vst.msk [vmem:[%s1909_s26 + $0x48] sm:$0xf] %vm1092_vm4, %v1078_v59  ;;  %v979_v3 = vmul.f32 %v1894_v62, %v943_v63 }
  0xdd   : > { %v1063_v2 = vpack.c.bf16 %v1031_v60, %v1031_v60  ;;  %v928_v4 = vld [vmem:[#allocation2 + $0x20] sm:$0xff]  ;;  %909 = vst.msk [vmem:[#allocation2 + $0xa0] sm:$0xff] %vm305_vm3, %v876_v61  ;;  %v838_v63 = vpop.f32.mrf.mxu3 }
  0xde   : > { %v964_v5 = vmul.f32 %v1894_v62, %v928_v4  ;;  %v1015_v8 = vadd.f32 %v1899_v0, %v979_v3  ;;  %894 = vst.msk [vmem:[#allocation2 + $0x28] sm:$0xff] %vm305_vm3, %v861_v1 }
  0xdf   : > { %v796_v7 = vpop.f32.mrf.mxu1  ;;  %1096 = vst.msk [vmem:[%s1909_s26 + $0xc] sm:$0xf] %vm1092_vm4, %v1063_v2  ;;  %v739_v11 = vpop.f32.mrf.mxu2 }
  0xe0   : > { %v1000_v9 = vadd.f32 %v1899_v0, %v964_v5  ;;  %v1047_v13 = vmax.f32 %v1015_v8, 0.0  ;;  %v829_v14 = vadd.f32 %v828_v28, %v739_v11 }
  0xe1   : > { %v702_v16 = vpop.f32.mrf.mxu0 }
  0xe2   : > { %v1032_v17 = vmax.f32 %v1000_v9, 0.0  ;;  %v792_v18 = vadd.f32 %v791_v30, %v702_v16  ;;  %v1079_v19 = vpack.c.bf16 %v1047_v13, %v1047_v13  ;;  %v877_v20 = vadd.f32 %v829_v14, %v359_v10  ;;  %v362_v9 = vld [vmem:[#allocation2 + $0xc0] sm:$0xff]  ;;  %v347_v14 = vld [vmem:[#allocation2 + $0x48] sm:$0xff] }
  0xe4   : > { %v1064_v21 = vpack.c.bf16 %v1032_v17, %v1032_v17  ;;  %v862_v22 = vadd.f32 %v792_v18, %v344_v15  ;;  %1112 = vst.msk [vmem:[%s1909_s26 + $0x4c] sm:$0xf] %vm1092_vm4, %v1079_v19  ;;  %v944_v23 = vld [vmem:[#allocation2 + $0xa0] sm:$0xff] }
  0xe5   : > { %v980_v24 = vmul.f32 %v1894_v62, %v944_v23  ;;  %v929_v26 = vld [vmem:[#allocation2 + $0x28] sm:$0xff]  ;;  %910 = vst.msk [vmem:[#allocation2 + $0xa8] sm:$0xff] %vm305_vm3, %v877_v20 }
  0xe6   : > { %1097 = vst.msk [vmem:[%s1909_s26 + $0x10] sm:$0xf] %vm1092_vm4, %v1064_v21  ;;  %v965_v28 = vmul.f32 %v1894_v62, %v929_v26 }
  0xe7   : > { %v798_v25 = vpop.f32.mrf.mxu1  ;;  %v1016_v27 = vadd.f32 %v1899_v0, %v980_v24  ;;  %895 = vst.msk [vmem:[#allocation2 + $0x30] sm:$0xff] %vm305_vm3, %v862_v22  ;;  %v742_v30 = vpop.f32.mrf.mxu2 }
  0xe8   : > { %v832_v31 = vadd.f32 %v831_v47, %v742_v30  ;;  %v1001_v35 = vadd.f32 %v1899_v0, %v965_v28  ;;  %v841_v28 = vpop.f32.mrf.mxu3  ;;  %v363_v30 = vld [vmem:[#allocation2 + $0xc8] sm:$0xff] }
  0xe9   : > { %v704_v33 = vpop.f32.mrf.mxu0  ;;  %v1048_v34 = vmax.f32 %v1016_v27, 0.0 }
  0xea   : > { %v794_v36 = vadd.f32 %v793_v46, %v704_v33  ;;  %v878_v38 = vadd.f32 %v832_v31, %v360_v29  ;;  %v1033_v40 = vmax.f32 %v1001_v35, 0.0 }
  0xeb   : > { %v1080_v39 = vpack.c.bf16 %v1048_v34, %v1048_v34  ;;  %v348_v34 = vld [vmem:[#allocation2 + $0x50] sm:$0xff] }
  0xec   : > { %v863_v41 = vadd.f32 %v794_v36, %v345_v32  ;;  %911 = vst.msk [vmem:[#allocation2 + $0xb0] sm:$0xff] %vm305_vm3, %v878_v38  ;;  %v1065_v42 = vpack.c.bf16 %v1033_v40, %v1033_v40  ;;  %v945_v43 = vld [vmem:[#allocation2 + $0xa8] sm:$0xff] }
  0xed   : > { %1113 = vst.msk [vmem:[%s1909_s26 + $0x50] sm:$0xf] %vm1092_vm4, %v1080_v39  ;;  %v981_v45 = vmul.f32 %v1894_v62, %v945_v43 }
  0xee   : > { %v930_v47 = vld [vmem:[#allocation2 + $0x30] sm:$0xff]  ;;  %896 = vst.msk [vmem:[#allocation2 + $0x38] sm:$0xff] %vm305_vm3, %v863_v41 }
  0xef   : > { %v1953_v44 = vpop.f32.mrf.mxu1  ;;  %1098 = vst.msk [vmem:[%s1909_s26 + $0x14] sm:$0xf] %vm1092_vm4, %v1065_v42  ;;  %v966_v46 = vmul.f32 %v1894_v62, %v930_v47  ;;  %v744_v49 = vpop.f32.mrf.mxu2  ;;  %v1017_v50 = vadd.f32 %v1899_v0, %v981_v45 }
  0xf0   : > { %v834_v51 = vadd.f32 %v833_v12, %v744_v49 }
  0xf1   : > { %v707_v53 = vpop.f32.mrf.mxu0  ;;  %v1002_v54 = vadd.f32 %v1899_v0, %v966_v46  ;;  %v1049_v56 = vmax.f32 %v1017_v50, 0.0  ;;  %v843_v50 = vpop.f32.mrf.mxu3 }
  0xf2   : > { %v797_v55 = vadd.f32 %v796_v7, %v707_v53  ;;  %v879_v57 = vadd.f32 %v834_v51, %v361_v48 }
  0xf3   : > { %v1034_v59 = vmax.f32 %v1002_v54, 0.0  ;;  %v946_v60 = vld [vmem:[#allocation2 + $0xb0] sm:$0xff]  ;;  %v1081_v1 = vpack.c.bf16 %v1049_v56, %v1049_v56 }
  0xf4   : > { %v864_v61 = vadd.f32 %v797_v55, %v346_v52  ;;  %v982_v2 = vmul.f32 %v1894_v62, %v946_v60  ;;  %912 = vst.msk [vmem:[#allocation2 + $0xb8] sm:$0xff] %vm305_vm3, %v879_v57  ;;  %v349_v52 = vld [vmem:[#allocation2 + $0x58] sm:$0xff] }
  0xf5   : > { %v1066_v3 = vpack.c.bf16 %v1034_v59, %v1034_v59  ;;  %v931_v4 = vld [vmem:[#allocation2 + $0x38] sm:$0xff]  ;;  %1114 = vst.msk [vmem:[%s1909_s26 + $0x54] sm:$0xf] %vm1092_vm4, %v1081_v1 }
  0xf6   : > { %897 = vst.msk [vmem:[#allocation2 + $0x40] sm:$0xff] %vm305_vm3, %v864_v61  ;;  %v1018_v7 = vadd.f32 %v1899_v0, %v982_v2  ;;  %v967_v8 = vmul.f32 %v1894_v62, %v931_v4 }
  0xf7   : > { %v803_v5 = vpop.f32.mrf.mxu1  ;;  %1099 = vst.msk [vmem:[%s1909_s26 + $0x18] sm:$0xf] %vm1092_vm4, %v1066_v3  ;;  %v747_v10 = vpop.f32.mrf.mxu2 }
  0xf8   : > { %v1050_v11 = vmax.f32 %v1018_v7, 0.0  ;;  %v1003_v12 = vadd.f32 %v1899_v0, %v967_v8  ;;  %v837_v13 = vadd.f32 %v836_v37, %v747_v10  ;;  %v365_v7 = vld [vmem:[#allocation2 + $0xd8] sm:$0xff] }
  0xf9   : > { %v709_v15 = vpop.f32.mrf.mxu0 }
  0xfa   : > { %v799_v16 = vadd.f32 %v798_v25, %v709_v15  ;;  %v1082_v17 = vpack.c.bf16 %v1050_v11, %v1050_v11  ;;  %v1035_v18 = vmax.f32 %v1003_v12, 0.0  ;;  %v880_v19 = vadd.f32 %v837_v13, %v362_v9  ;;  %v350_v11 = vld [vmem:[#allocation2 + $0x60] sm:$0xff] }
  0xfb   : > { %v947_v20 = vld [vmem:[#allocation2 + $0xb8] sm:$0xff] }
  0xfc   : > { %v865_v21 = vadd.f32 %v799_v16, %v347_v14  ;;  %1115 = vst.msk [vmem:[%s1909_s26 + $0x58] sm:$0xf] %vm1092_vm4, %v1082_v17  ;;  %v1067_v22 = vpack.c.bf16 %v1035_v18, %v1035_v18  ;;  %v983_v23 = vmul.f32 %v1894_v62, %v947_v20  ;;  %v846_v14 = vpop.f32.mrf.mxu3 }
  0xfd   : > { %v932_v24 = vld [vmem:[#allocation2 + $0x40] sm:$0xff]  ;;  %913 = vst.msk [vmem:[#allocation2 + $0xc0] sm:$0xff] %vm305_vm3, %v880_v19 }
  0xfe   : > { %v968_v26 = vmul.f32 %v1894_v62, %v932_v24  ;;  %1100 = vst.msk [vmem:[%s1909_s26 + $0x1c] sm:$0xf] %vm1092_vm4, %v1067_v22  ;;  %v1019_v25 = vadd.f32 %v1899_v0, %v983_v23 }
  0xff   : > { %v806_v27 = vpop.f32.mrf.mxu1  ;;  %898 = vst.msk [vmem:[#allocation2 + $0x48] sm:$0xff] %vm305_vm3, %v865_v21  ;;  %v749_v31 = vpop.f32.mrf.mxu2 }
 0x100   : > { %v1004_v29 = vadd.f32 %v1899_v0, %v968_v26  ;;  %v1051_v32 = vmax.f32 %v1019_v25, 0.0  ;;  %v839_v33 = vadd.f32 %v838_v63, %v749_v31  ;;  %v366_v25 = vld [vmem:[#allocation2 + $0xe0] sm:$0xff] }
 0x101   : > { %v712_v35 = vpop.f32.mrf.mxu0 }
 0x102   : > { %v1036_v36 = vmax.f32 %v1004_v29, 0.0  ;;  %v802_v37 = vadd.f32 %v1953_v44, %v712_v35  ;;  %v1083_v38 = vpack.c.bf16 %v1051_v32, %v1051_v32  ;;  %v881_v39 = vadd.f32 %v839_v33, %v363_v30  ;;  %v364_v44 = vld [vmem:[#allocation2 + $0xd0] sm:$0xff]  ;;  %v351_v33 = vld [vmem:[#allocation2 + $0x68] sm:$0xff] }
 0x104   : > { %v1068_v40 = vpack.c.bf16 %v1036_v36, %v1036_v36  ;;  %v866_v41 = vadd.f32 %v802_v37, %v348_v34  ;;  %1116 = vst.msk [vmem:[%s1909_s26 + $0x5c] sm:$0xf] %vm1092_vm4, %v1083_v38  ;;  %v948_v42 = vld [vmem:[#allocation2 + $0xc0] sm:$0xff] }
 0x105   : > { %v984_v43 = vmul.f32 %v1894_v62, %v948_v42  ;;  %914 = vst.msk [vmem:[#allocation2 + $0xc8] sm:$0xff] %vm305_vm3, %v881_v39 }
 0x106   : > { %1101 = vst.msk [vmem:[%s1909_s26 + $0x20] sm:$0xf] %vm1092_vm4, %v1068_v40  ;;  %v933_v47 = vld [vmem:[#allocation2 + $0x48] sm:$0xff]  ;;  %v848_v40 = vpop.f32.mrf.mxu3 }
 0x107   : > { %v808_v45 = vpop.f32.mrf.mxu1  ;;  %v1020_v46 = vadd.f32 %v1899_v0, %v984_v43  ;;  %v969_v48 = vmul.f32 %v1894_v62, %v933_v47  ;;  %899 = vst.msk [vmem:[#allocation2 + $0x50] sm:$0xff] %vm305_vm3, %v866_v41  ;;  %v752_v49 = vpop.f32.mrf.mxu2 }
 0x108   : > { %v842_v51 = vadd.f32 %v841_v28, %v752_v49 }
 0x109   : > { %v714_v53 = vpop.f32.mrf.mxu0  ;;  %v1052_v54 = vmax.f32 %v1020_v46, 0.0  ;;  %v1005_v55 = vadd.f32 %v1899_v0, %v969_v48  ;;  %v354_v48 = vld [vmem:[#allocation2 + $0x80] sm:$0xff] }
 0x10a   : > { %v804_v56 = vadd.f32 %v803_v5, %v714_v53  ;;  %v882_v57 = vadd.f32 %v842_v51, %v364_v44  ;;  %v367_v51 = vld [vmem:[#allocation2 + $0xe8] sm:$0xff] }
 0x10b   : > { %v1084_v59 = vpack.c.bf16 %v1052_v54, %v1052_v54  ;;  %v1037_v60 = vmax.f32 %v1005_v55, 0.0 }
 0x10c   : > { %v867_v61 = vadd.f32 %v804_v56, %v349_v52  ;;  %915 = vst.msk [vmem:[#allocation2 + $0xd0] sm:$0xff] %vm305_vm3, %v882_v57  ;;  %v949_v1 = vld [vmem:[#allocation2 + $0xc8] sm:$0xff]  ;;  %v352_v56 = vld [vmem:[#allocation2 + $0x70] sm:$0xff] }
 0x10d   : > { %1117 = vst.msk [vmem:[%s1909_s26 + $0x60] sm:$0xf] %vm1092_vm4, %v1084_v59  ;;  %v1069_v63 = vpack.c.bf16 %v1037_v60, %v1037_v60  ;;  %v985_v3 = vmul.f32 %v1894_v62, %v949_v1 }
 0x10e   : > { %v934_v4 = vld [vmem:[#allocation2 + $0x50] sm:$0xff]  ;;  %900 = vst.msk [vmem:[#allocation2 + $0x58] sm:$0xff] %vm305_vm3, %v867_v61 }
 0x10f   : > { %v1996_v2 = vpop.f32.mrf.mxu1  ;;  %1102 = vst.msk [vmem:[%s1909_s26 + $0x24] sm:$0xf] %vm1092_vm4, %v1069_v63  ;;  %v970_v5 = vmul.f32 %v1894_v62, %v934_v4  ;;  %v754_v8 = vpop.f32.mrf.mxu2  ;;  %v1021_v9 = vadd.f32 %v1899_v0, %v985_v3 }
 0x110   : > { %v844_v10 = vadd.f32 %v843_v50, %v754_v8 }
 0x111   : > { %v717_v12 = vpop.f32.mrf.mxu0  ;;  %v1006_v13 = vadd.f32 %v1899_v0, %v970_v5  ;;  %v1053_v16 = vmax.f32 %v1021_v9, 0.0  ;;  %v851_v5 = vpop.f32.mrf.mxu3 }
 0x112   : > { %v807_v15 = vadd.f32 %v806_v27, %v717_v12  ;;  %v883_v17 = vadd.f32 %v844_v10, %v365_v7  ;;  %v355_v7 = vld [vmem:[#allocation2 + $0x88] sm:$0xff]  ;;  %v368_v12 = vld [vmem:[#allocation2 + $0xf0] sm:$0xff] }
 0x113   : > { %v1038_v18 = vmax.f32 %v1006_v13, 0.0  ;;  %v950_v19 = vld [vmem:[#allocation2 + $0xd0] sm:$0xff]  ;;  %v1085_v21 = vpack.c.bf16 %v1053_v16, %v1053_v16  ;;  %v353_v16 = vld [vmem:[#allocation2 + $0x78] sm:$0xff] }
 0x114   : > { %v868_v20 = vadd.f32 %v807_v15, %v350_v11  ;;  %v986_v22 = vmul.f32 %v1894_v62, %v950_v19  ;;  %916 = vst.msk [vmem:[#allocation2 + $0xd8] sm:$0xff] %vm305_vm3, %v883_v17 }
 0x115   : > { %v1070_v23 = vpack.c.bf16 %v1038_v18, %v1038_v18  ;;  %v935_v24 = vld [vmem:[#allocation2 + $0x58] sm:$0xff]  ;;  %1118 = vst.msk [vmem:[%s1909_s26 + $0x64] sm:$0xf] %vm1092_vm4, %v1085_v21 }
 0x116   : > { %901 = vst.msk [vmem:[#allocation2 + $0x60] sm:$0xff] %vm305_vm3, %v868_v20  ;;  %v1022_v27 = vadd.f32 %v1899_v0, %v986_v22  ;;  %v971_v28 = vmul.f32 %v1894_v62, %v935_v24 }
 0x117   : > { %v2008_v26 = vpop.f32.mrf.mxu1  ;;  %1103 = vst.msk [vmem:[%s1909_s26 + $0x28] sm:$0xf] %vm1092_vm4, %v1070_v23  ;;  %v757_v29 = vpop.f32.mrf.mxu2 }
 0x118   : > { %v1054_v30 = vmax.f32 %v1022_v27, 0.0  ;;  %v1007_v31 = vadd.f32 %v1899_v0, %v971_v28  ;;  %v847_v32 = vadd.f32 %v846_v14, %v757_v29 }
 0x119   : > { %v719_v34 = vpop.f32.mrf.mxu0 }
 0x11a   : > { %v809_v35 = vadd.f32 %v808_v45, %v719_v34  ;;  %v1086_v36 = vpack.c.bf16 %v1054_v30, %v1054_v30  ;;  %v1039_v37 = vmax.f32 %v1007_v31, 0.0  ;;  %v884_v38 = vadd.f32 %v847_v32, %v366_v25  ;;  %v369_v34 = vld [vmem:[#allocation2 + $0xf8] sm:$0xff] }
 0x11b   : > { %v951_v39 = vld [vmem:[#allocation2 + $0xd8] sm:$0xff] }
 0x11c   : > { %v869_v41 = vadd.f32 %v809_v35, %v351_v33  ;;  %1119 = vst.msk [vmem:[%s1909_s26 + $0x68] sm:$0xf] %vm1092_vm4, %v1086_v36  ;;  %v1071_v42 = vpack.c.bf16 %v1039_v37, %v1039_v37  ;;  %v987_v43 = vmul.f32 %v1894_v62, %v951_v39  ;;  %v853_v33 = vpop.f32.mrf.mxu3 }
 0x11d   : > { %v936_v47 = vld [vmem:[#allocation2 + $0x60] sm:$0xff]  ;;  %917 = vst.msk [vmem:[#allocation2 + $0xe0] sm:$0xff] %vm305_vm3, %v884_v38 }
 0x11e   : > { %v972_v46 = vmul.f32 %v1894_v62, %v936_v47  ;;  %1104 = vst.msk [vmem:[%s1909_s26 + $0x2c] sm:$0xf] %vm1092_vm4, %v1071_v42  ;;  %v1023_v45 = vadd.f32 %v1899_v0, %v987_v43 }
 0x11f   : > { %v816_v44 = vpop.f32.mrf.mxu1  ;;  %902 = vst.msk [vmem:[#allocation2 + $0x68] sm:$0xff] %vm305_vm3, %v869_v41  ;;  %v759_v52 = vpop.f32.mrf.mxu2 }
 0x120   : > { %v817_v49 = vadd.f32 %v816_v44, %v1889_v58  ;;  %v1008_v50 = vadd.f32 %v1899_v0, %v972_v46  ;;  %v1055_v53 = vmax.f32 %v1023_v45, 0.0  ;;  %v849_v55 = vadd.f32 %v848_v40, %v759_v52 }
 0x121   : > { %v722_v57 = vpop.f32.mrf.mxu0 }
 0x122   : > { %v872_v54 = vadd.f32 %v817_v49, %v354_v48  ;;  %v1040_v59 = vmax.f32 %v1008_v50, 0.0  ;;  %v812_v60 = vadd.f32 %v1996_v2, %v722_v57  ;;  %v1087_v61 = vpack.c.bf16 %v1055_v53, %v1055_v53 }
 0x123   : > { %v885_v58 = vadd.f32 %v849_v55, %v367_v51 }
 0x124   : > { %905 = vst.msk [vmem:[#allocation2 + $0x80] sm:$0xff] %vm305_vm3, %v872_v54  ;;  %v1072_v63 = vpack.c.bf16 %v1040_v59, %v1040_v59  ;;  %v870_v1 = vadd.f32 %v812_v60, %v352_v56  ;;  %v952_v3 = vld [vmem:[#allocation2 + $0xe0] sm:$0xff] }
 0x125   : > { %1120 = vst.msk [vmem:[%s1909_s26 + $0x6c] sm:$0xf] %vm1092_vm4, %v1087_v61  ;;  %v988_v4 = vmul.f32 %v1894_v62, %v952_v3 }
 0x126   : > { %1105 = vst.msk [vmem:[%s1909_s26 + $0x30] sm:$0xf] %vm1092_vm4, %v1072_v63  ;;  %v937_v9 = vld [vmem:[#allocation2 + $0x68] sm:$0xff] }
 0x127   : > { %v818_v8 = vpop.f32.mrf.mxu1  ;;  %918 = vst.msk [vmem:[#allocation2 + $0xe8] sm:$0xff] %vm305_vm3, %v885_v58  ;;  %v1024_v10 = vadd.f32 %v1899_v0, %v988_v4  ;;  %v973_v11 = vmul.f32 %v1894_v62, %v937_v9  ;;  %v762_v13 = vpop.f32.mrf.mxu2 }
 0x128   : > { %v819_v2 = vadd.f32 %v818_v8, %v1907_v6  ;;  %903 = vst.msk [vmem:[#allocation2 + $0x70] sm:$0xff] %vm305_vm3, %v870_v1  ;;  %v852_v15 = vadd.f32 %v851_v5, %v762_v13 }
 0x129   : > { %v724_v17 = vpop.f32.mrf.mxu0  ;;  %v1056_v18 = vmax.f32 %v1024_v10, 0.0  ;;  %v1009_v19 = vadd.f32 %v1899_v0, %v973_v11 }
 0x12a   : > { %v873_v14 = vadd.f32 %v819_v2, %v355_v7  ;;  %v814_v21 = vadd.f32 %v2008_v26, %v724_v17  ;;  %v886_v22 = vadd.f32 %v852_v15, %v368_v12 }
 0x12b   : > { %v940_v20 = vld [vmem:[#allocation2 + $0x80] sm:$0xff]  ;;  %v1088_v23 = vpack.c.bf16 %v1056_v18, %v1056_v18  ;;  %v1041_v24 = vmax.f32 %v1009_v19, 0.0 }
 0x12c   : > { %v976_v6 = vmul.f32 %v1894_v62, %v940_v20  ;;  %906 = vst.msk [vmem:[#allocation2 + $0x88] sm:$0xff] %vm305_vm3, %v873_v14  ;;  %v871_v27 = vadd.f32 %v814_v21, %v353_v16 }
 0x12d   : > { %919 = vst.msk [vmem:[#allocation2 + $0xf0] sm:$0xff] %vm305_vm3, %v886_v22  ;;  %v1073_v25 = vpack.c.bf16 %v1041_v24, %v1041_v24 }
 0x12e   : > { %v1012_v28 = vadd.f32 %v1899_v0, %v976_v6  ;;  %1121 = vst.msk [vmem:[%s1909_s26 + $0x70] sm:$0xf] %vm1092_vm4, %v1088_v23  ;;  %v953_v29 = vld [vmem:[#allocation2 + $0xe8] sm:$0xff] }
 0x12f   : > { %v989_v26 = vmul.f32 %v1894_v62, %v953_v29  ;;  %v938_v31 = vld [vmem:[#allocation2 + $0x70] sm:$0xff]  ;;  %904 = vst.msk [vmem:[#allocation2 + $0x78] sm:$0xff] %vm305_vm3, %v871_v27  ;;  %v764_v35 = vpop.f32.mrf.mxu2 }
 0x130   : > { %v1044_v30 = vmax.f32 %v1012_v28, 0.0  ;;  %1106 = vst.msk [vmem:[%s1909_s26 + $0x34] sm:$0xf] %vm1092_vm4, %v1073_v25  ;;  %v974_v32 = vmul.f32 %v1894_v62, %v938_v31  ;;  %v854_v38 = vadd.f32 %v853_v33, %v764_v35 }
 0x131   : > { %v1025_v37 = vadd.f32 %v1899_v0, %v989_v26 }
 0x132   : > { %v1076_v36 = vpack.c.bf16 %v1044_v30, %v1044_v30  ;;  %v1010_v39 = vadd.f32 %v1899_v0, %v974_v32  ;;  %v887_v43 = vadd.f32 %v854_v38, %v369_v34 }
 0x133   : > { %v941_v40 = vld [vmem:[#allocation2 + $0x88] sm:$0xff]  ;;  %v1057_v41 = vmax.f32 %v1025_v37, 0.0 }
 0x134   : > { %1109 = vst.msk [vmem:[%s1909_s26 + $0x40] sm:$0xf] %vm1092_vm4, %v1076_v36  ;;  %v977_v42 = vmul.f32 %v1894_v62, %v941_v40  ;;  %v1042_v47 = vmax.f32 %v1010_v39, 0.0  ;;  %v954_v46 = vld [vmem:[#allocation2 + $0xf0] sm:$0xff] }
 0x135   : > { %v1089_v48 = vpack.c.bf16 %v1057_v41, %v1057_v41  ;;  %v990_v45 = vmul.f32 %v1894_v62, %v954_v46  ;;  %920 = vst.msk [vmem:[#allocation2 + $0xf8] sm:$0xff] %vm305_vm3, %v887_v43 }
 0x136   : > { %v1013_v44 = vadd.f32 %v1899_v0, %v977_v42  ;;  %v1074_v49 = vpack.c.bf16 %v1042_v47, %v1042_v47  ;;  %v939_v50 = vld [vmem:[#allocation2 + $0x78] sm:$0xff] }
 0x137   : > { %1122 = vst.msk [vmem:[%s1909_s26 + $0x74] sm:$0xf] %vm1092_vm4, %v1089_v48  ;;  %v1026_v52 = vadd.f32 %v1899_v0, %v990_v45  ;;  %v975_v53 = vmul.f32 %v1894_v62, %v939_v50 }
 0x138   : > { %v1045_v51 = vmax.f32 %v1013_v44, 0.0  ;;  %1107 = vst.msk [vmem:[%s1909_s26 + $0x38] sm:$0xf] %vm1092_vm4, %v1074_v49 }
 0x139   : > { %v1058_v55 = vmax.f32 %v1026_v52, 0.0  ;;  %v1011_v56 = vadd.f32 %v1899_v0, %v975_v53 }
 0x13a   : > { %v1077_v54 = vpack.c.bf16 %v1045_v51, %v1045_v51 }
 0x13b   : > { %v1090_v57 = vpack.c.bf16 %v1058_v55, %v1058_v55  ;;  %v1043_v59 = vmax.f32 %v1011_v56, 0.0 }
 0x13c   : > { %1110 = vst.msk [vmem:[%s1909_s26 + $0x44] sm:$0xf] %vm1092_vm4, %v1077_v54  ;;  %v955_v60 = vld [vmem:[#allocation2 + $0xf8] sm:$0xff] }
 0x13d   : > { %1123 = vst.msk [vmem:[%s1909_s26 + $0x78] sm:$0xf] %vm1092_vm4, %v1090_v57  ;;  %v1075_v61 = vpack.c.bf16 %v1043_v59, %v1043_v59  ;;  %v991_v58 = vmul.f32 %v1894_v62, %v955_v60 }
 0x13f   : > { %1108 = vst.msk [vmem:[%s1909_s26 + $0x3c] sm:$0xf] %vm1092_vm4, %v1075_v61  ;;  %v1027_v63 = vadd.f32 %v1899_v0, %v991_v58 }
 0x141   : > { %v1059_v1 = vmax.f32 %v1027_v63, 0.0 }
 0x143   : > { %v1091_v3 = vpack.c.bf16 %v1059_v1, %v1059_v1 }
 0x145   : > { %1124 = vst.msk [vmem:[%s1909_s26 + $0x7c] sm:$0xf] %vm1092_vm4, %v1091_v3 }
 0x146   : > { %1603 = shalt.err (!%p1600_p5)
}
 0x147   : > { %s1658_s22 = smov 64   ;;  %s1659_s24 = smov 4  }
 0x148   : > { %1515 = dma.vmem_to_hbm [thread:$0]  (%p1725_p4), %s1140_s18, 2048, %s1142_s7, %s1126_s8, %s1658_s22, %s1658_s22, %s1659_s24  }
 0x149 PF: > { %p1521_p6 = scmp.ge.s32.totalorder %s1654_s20, 2  ;;  %s1156_s26 = sand.u32 1, %s1634_s15  }
 0x14a   : > { %s1157_s29 = scalar_lea.sflag [#allocation4], %s1156_s26 }
 0x14b   : > { %p1518_p7 = pnand %p1521_p6, %p1732_p8 }
 0x14d   : > { %p1519_p9 = pneg %p1518_p7 }
 0x14f   : > { %1629 = dma.done.wait (%p1519_p9), %s1157_s29, 2048  }
 0x150   : > { %1631 = vsyncadd (%p1519_p9), %s1157_s29, 4294965248  ;;  %s17_s20 = sadd.s32 1, %s1654_s20   ;;  %s2124_s15 = smov %s1638_s16 }
 0x151   : > { %p14_p10 = scmp.ge.s32.totalorder %s17_s20, 10   ;;  %s2125_s16 = smov %s1642_s17 }
 0x152   : > { %s2126_s17 = smov %s1738_s28  ;;  %s2127_s18 = smov %s1650_s19 }
 0x153   : > { %s2128_s19 = smov %s2130_s23  ;;  %16 = sbr.rel (!%p14_p10) target bundleno = 4 (0x4), region = 88 }
 0x158   :  { %1163 = vsyncpa [#allocation4], 1 }
 0x159   :  { %1165 = vsyncpa [#allocation4 + $0x1], 1 }

</bundles_post_ra>
